<compile_context>
chip_gen: v6e
topology: v6e:2x2x1
jax: 0.10.0
libtpu: 0.0.40
codegen_flags: <defaults>
</compile_context>

<pallas_src>
import functools

import numpy as np
import jax
import jax.numpy as jnp
from jax import lax
from jax.experimental import pallas as pl
from jax.experimental.pallas import tpu as pltpu


# Conv1d hyper-parameters of the Aeris feature extractor: (kernel, stride, pad).
_CONV_CFG = ((8, 4, 2), (4, 2, 1), (3, 1, 1))
_LANE = 128
_SUB = 8


def _round_up(x, m):
    return (x + m - 1) // m * m


# ------------------------------- fused kernel --------------------------------

def _fused_forward_kernel(x_ref, p_ref, out_ref, *, in_w, n_pad):
    """x_ref  : (Bp, in_w)  lane-dense activation slab  [state_pm | action | 0...]
       p_ref  : (R,  n_pad) packed parameter slab (6 banded/dense weights + biases)
       out_ref: (Bp, n_pad) lane-dense output (real `hidden` cols sliced by wrapper)."""
    f32 = jnp.float32
    ob = in_w + 5 * n_pad                      # bias block row offset (8-aligned)
    b = p_ref[ob:ob + _SUB, :]                 # (8, n_pad): rows 0..5 = the 6 biases

    def gemm(h, row0, rows, bias_row, relu=True):
        y = jnp.dot(h, p_ref[row0:row0 + rows, :], preferred_element_type=f32)
        y = y + b[bias_row:bias_row + 1, :]
        return jnp.maximum(y, 0.0) if relu else y

    h = gemm(x_ref[...], 0, in_w, 0)                               # conv1 (banded state + action proj, mean-folded bias)
    h = gemm(h, in_w, n_pad, 1)                                    # conv2 (banded)
    h = gemm(h, in_w + 1 * n_pad, n_pad, 2)                        # conv3 (banded) -> already position-major "flatten"
    h = gemm(h, in_w + 2 * n_pad, n_pad, 3)                        # fc1
    h = gemm(h, in_w + 3 * n_pad, n_pad, 4)                        # fc2
    out_ref[...] = gemm(h, in_w + 4 * n_pad, n_pad, 5, relu=False)  # fc3


# --------------------------------- wrapper -----------------------------------

@functools.partial(jax.jit, static_argnums=(3,))
def vanilla_dop_forward(slab, state, action, hidden):
    """VanillaDOPModelAeris.forward: predicted_code = motivator(state, action)."""
    B, Cs, W = state.shape
    A = action.shape[1]
    n_pad = slab.shape[1]
    in_w = slab.shape[0] - 5 * n_pad - _SUB
    state_w = W * Cs
    Bp = _round_up(B, _SUB)

    # Layout plumbing only (fused by XLA outside the kernel): position-major state
    # + action laid into one lane-dense activation slab, batch padded to 8 rows.
    state_pm = jnp.transpose(state, (0, 2, 1)).reshape(B, state_w)
    x = jnp.concatenate(
        [state_pm, action, jnp.zeros((B, in_w - state_w - A), jnp.float32)],
        axis=-1)
    x = jnp.pad(x, ((0, Bp - B), (0, 0)))

    vmem = pl.BlockSpec(memory_space=pltpu.MemorySpace.VMEM)
    out = pl.pallas_call(
        functools.partial(_fused_forward_kernel, in_w=in_w, n_pad=n_pad),
        out_shape=jax.ShapeDtypeStruct((Bp, n_pad), jnp.float32),
        in_specs=[vmem, vmem],
        out_specs=vmem,
    )(x, slab)
    return out[:B, :hidden]


def prepare_params(p, action_dim):
    """One-time host-side repack (at init / after running-stats updates, never in
    the hot path):
      * each conv layer -> a block-banded GEMM matrix acting on position-major flat
        activations (zero-padding rows omitted),
      * conv1 split into a state band + an action projection (taps pre-summed),
      * running-mean centering folded into a flat per-position conv1 bias,
      * FC weights transposed to (in, out), fc1 rows permuted to the position-major
        flatten,
      * everything zero-padded to 128 output lanes and packed into ONE (R, 128)
        f32 slab (weights at 8-aligned row offsets, biases in a trailing 8-row
        block)."""
    (k1, s1, p1), (k2, s2, p2), (k3, s3, p3) = _CONV_CFG
    c1_w = np.asarray(p["c1_w"], np.float32); c1_b = np.asarray(p["c1_b"], np.float32)
    c2_w = np.asarray(p["c2_w"], np.float32); c2_b = np.asarray(p["c2_b"], np.float32)
    c3_w = np.asarray(p["c3_w"], np.float32); c3_b = np.asarray(p["c3_b"], np.float32)
    fc1_w = np.asarray(p["fc1_w"], np.float32); fc1_b = np.asarray(p["fc1_b"], np.float32)
    fc2_w = np.asarray(p["fc2_w"], np.float32); fc2_b = np.asarray(p["fc2_b"], np.float32)
    fc3_w = np.asarray(p["fc3_w"], np.float32); fc3_b = np.asarray(p["fc3_b"], np.float32)
    mean = np.asarray(p["state_mean"], np.float32)

    K, C, _ = c1_w.shape
    A = action_dim
    Cs = C - A
    W = mean.shape[1]
    C2 = c3_w.shape[0]
    H = fc3_w.shape[0]
    L1 = (W + 2 * p1 - k1) // s1 + 1
    L2 = (L1 + 2 * p2 - k2) // s2 + 1
    L3 = (L2 + 2 * p3 - k3) // s3 + 1
    assert fc1_w.shape[1] == C2 * L3

    state_w = W * Cs
    in_w = _round_up(state_w + A, _LANE)
    n_pad = _round_up(max(L1 * K, L2 * C2, L3 * C2, H), _LANE)
    R = in_w + 5 * n_pad + _SUB
    slab = np.zeros((R, n_pad), np.float32)
    ow2, ow3 = in_w, in_w + n_pad
    of1, of2, of3 = in_w + 2 * n_pad, in_w + 3 * n_pad, in_w + 4 * n_pad
    ob = in_w + 5 * n_pad

    # ---- conv1: state band + action projection + mean-folded flat bias ---------
    m_pad = np.zeros((C, W + 2 * p1), np.float32)
    m_pad[:, p1:p1 + W] = mean
    for l in range(L1):
        for t in range(k1):
            pos = l * s1 - p1 + t
            if 0 <= pos < W:                       # taps landing in zero-pad are dropped
                slab[pos * Cs:(pos + 1) * Cs, l * K:(l + 1) * K] += c1_w[:, :Cs, t].T
                slab[state_w:state_w + A, l * K:(l + 1) * K] += c1_w[:, Cs:, t].T
        mc = np.einsum("oct,ct->o", c1_w, m_pad[:, l * s1:l * s1 + k1])
        slab[ob + 0, l * K:(l + 1) * K] = c1_b - mc     # conv1(x - m) = conv1(x) - conv1(m)

    # ---- conv2 / conv3: block-banded matrices + position-tiled biases ----------
    for l in range(L2):
        for t in range(k2):
            pos = l * s2 - p2 + t
            if 0 <= pos < L1:
                slab[ow2 + pos * K:ow2 + (pos + 1) * K,
                     l * C2:(l + 1) * C2] += c2_w[:, :, t].T
    slab[ob + 1, :L2 * C2] = np.tile(c2_b, L2)

    for l in range(L3):
        for t in range(k3):
            pos = l * s3 - p3 + t
            if 0 <= pos < L2:
                slab[ow3 + pos * C2:ow3 + (pos + 1) * C2,
                     l * C2:(l + 1) * C2] += c3_w[:, :, t].T
    slab[ob + 2, :L3 * C2] = np.tile(c3_b, L3)

    # ---- FC head: (in, out) layout; fc1 rows permuted to position-major flatten -
    fc1_pm = fc1_w.reshape(H, C2, L3).transpose(2, 1, 0).reshape(L3 * C2, H)
    slab[of1:of1 + L3 * C2, :H] = fc1_pm
    slab[ob + 3, :H] = fc1_b
    slab[of2:of2 + H, :H] = fc2_w.T
    slab[ob + 4, :H] = fc2_b
    slab[of3:of3 + H, :H] = fc3_w.T
    slab[ob + 5, :H] = fc3_b

    return jnp.asarray(slab), H


# ------------------- pure-JAX reference (correctness only) -------------------

def forward_reference(params, state, action):
    B, Cs, W = state.shape
    A = action.shape[1]
    a = jnp.broadcast_to(action[:, :, None], (B, A, W))
    x = jnp.concatenate([state, a], axis=1) - params["state_mean"][None]

    def conv(x, w, b, stride, pad):
        y = lax.conv_general_dilated(x, w, (stride,), [(pad, pad)],
                                     dimension_numbers=("NCH", "OIH", "NCH"))
        return jax.nn.relu(y + b[None, :, None])

    x = conv(x, params["c1_w"], params["c1_b"], 4, 2)
    x = conv(x, params["c2_w"], params["c2_b"], 2, 1)
    x = conv(x, params["c3_w"], params["c3_b"], 1, 1)
    x = x.reshape(B, -1)
    x = jax.nn.relu(x @ params["fc1_w"].T + params["fc1_b"])
    x = jax.nn.relu(x @ params["fc2_w"].T + params["fc2_b"])
    return x @ params["fc3_w"].T + params["fc3_b"]


# ---------------------------- deterministic init ------------------------------

def _orthogonal(key, shape, gain):
    return gain * jax.nn.initializers.orthogonal()(key, shape, jnp.float32)


def init_params(key, channels, W, K, hidden):
    # Mirrors the module __init__ shapes (orthogonal weights, zero biases).
    fc_count = K * W // 4
    keys = jax.random.split(key, 7)
    return dict(
        state_mean=0.01 * jax.random.normal(keys[6], (channels, W), jnp.float32),
        c1_w=_orthogonal(keys[0], (K, channels * 8), np.sqrt(2)).reshape(K, channels, 8),
        c1_b=jnp.zeros((K,), jnp.float32),
        c2_w=_orthogonal(keys[1], (2 * K, K * 4), np.sqrt(2)).reshape(2 * K, K, 4),
        c2_b=jnp.zeros((2 * K,), jnp.float32),
        c3_w=_orthogonal(keys[2], (2 * K, 2 * K * 3), np.sqrt(2)).reshape(2 * K, 2 * K, 3),
        c3_b=jnp.zeros((2 * K,), jnp.float32),
        fc1_w=_orthogonal(keys[3], (hidden, fc_count), 0.1),
        fc1_b=jnp.zeros((hidden,), jnp.float32),
        fc2_w=_orthogonal(keys[4], (hidden, hidden), 0.1),
        fc2_b=jnp.zeros((hidden,), jnp.float32),
        fc3_w=_orthogonal(keys[5], (hidden, hidden), 0.01),
        fc3_b=jnp.zeros((hidden,), jnp.float32),
    )


# TODO(synk): error()/motivator_loss_function()/generator_loss_function(),
# RunningStats.update and the cdist regularization are training-time utilities
# that are not part of forward(); they are not implemented as kernels.

if __name__ == "__main__":
    # input_shape = (C_state=4, W=32), action_dim=4, kernels_count=8, hidden=32
    B, Cs, W, A, K, hidden = 2, 4, 32, 4, 8, 32
    channels = Cs + A

    key = jax.random.PRNGKey(0)
    kp, ks, ka = jax.random.split(key, 3)
    params = init_params(kp, channels, W, K, hidden)
    state = jax.random.normal(ks, (B, Cs, W), jnp.float32)
    action = jax.random.normal(ka, (B, A), jnp.float32)

    slab, H = prepare_params(params, action_dim=A)   # one-time host-side repack
    out = jax.block_until_ready(vanilla_dop_forward(slab, state, action, H))
    ref = forward_reference(params, state, action)

    assert out.shape == (B, hidden), out.shape
    np.testing.assert_allclose(np.asarray(out), np.asarray(ref), atol=2e-4, rtol=5e-3)
    print("KERNEL_OK")
</pallas_src>

<mosaic_0001>
module attributes {stable_mosaic.version = 11 : i64} {
  func.func @_fused_forward_kernel(%arg0: memref<8x256xf32, #tpu.memory_space<vmem>>, %arg1: memref<904x128xf32, #tpu.memory_space<vmem>>, %arg2: memref<8x128xf32, #tpu.memory_space<vmem>>) attributes {dimension_semantics = [], scalar_prefetch = 0 : i64, scratch_operands = 0 : i64, tpu.core_type = #tpu.core_type<tc>} {
    %c896 = arith.constant 896 : index
    %c0 = arith.constant 0 : index
    %0 = vector.load %arg1[%c896, %c0] : memref<904x128xf32, #tpu.memory_space<vmem>>, vector<8x128xf32>
    %c0_0 = arith.constant 0 : index
    %c0_1 = arith.constant 0 : index
    %1 = vector.load %arg0[%c0_0, %c0_1] : memref<8x256xf32, #tpu.memory_space<vmem>>, vector<8x256xf32>
    %c0_2 = arith.constant 0 : index
    %c0_3 = arith.constant 0 : index
    %2 = vector.load %arg1[%c0_2, %c0_3] : memref<904x128xf32, #tpu.memory_space<vmem>>, vector<256x128xf32>
    %cst = arith.constant dense<0.000000e+00> : vector<8x128xf32>
    %3 = tpu.matmul %1, %2, %cst {dimension_numbers = #tpu.dot_dimension_numbers<[1], [0], [0], [1], [0, 0, 1, 1], [], []>} : vector<8x256xf32>, vector<256x128xf32>, vector<8x128xf32> -> vector<8x128xf32>
    %4 = vector.extract_strided_slice %0 {offsets = [0, 0], sizes = [1, 128], strides = [1, 1]} : vector<8x128xf32> to vector<1x128xf32>
    %5 = vector.broadcast %4 : vector<1x128xf32> to vector<8x128xf32>
    %6 = arith.addf %3, %5 : vector<8x128xf32>
    %cst_4 = arith.constant 0.000000e+00 : f32
    %7 = vector.broadcast %cst_4 : f32 to vector<8x128xf32>
    %8 = arith.maximumf %6, %7 : vector<8x128xf32>
    %c256 = arith.constant 256 : index
    %c0_5 = arith.constant 0 : index
    %9 = vector.load %arg1[%c256, %c0_5] : memref<904x128xf32, #tpu.memory_space<vmem>>, vector<128x128xf32>
    %cst_6 = arith.constant dense<0.000000e+00> : vector<8x128xf32>
    %10 = tpu.matmul %8, %9, %cst_6 {dimension_numbers = #tpu.dot_dimension_numbers<[1], [0], [0], [1], [0, 0, 1, 1], [], []>} : vector<8x128xf32>, vector<128x128xf32>, vector<8x128xf32> -> vector<8x128xf32>
    %11 = vector.extract_strided_slice %0 {offsets = [1, 0], sizes = [1, 128], strides = [1, 1]} : vector<8x128xf32> to vector<1x128xf32>
    %12 = vector.broadcast %11 : vector<1x128xf32> to vector<8x128xf32>
    %13 = arith.addf %10, %12 : vector<8x128xf32>
    %cst_7 = arith.constant 0.000000e+00 : f32
    %14 = vector.broadcast %cst_7 : f32 to vector<8x128xf32>
    %15 = arith.maximumf %13, %14 : vector<8x128xf32>
    %c384 = arith.constant 384 : index
    %c0_8 = arith.constant 0 : index
    %16 = vector.load %arg1[%c384, %c0_8] : memref<904x128xf32, #tpu.memory_space<vmem>>, vector<128x128xf32>
    %cst_9 = arith.constant dense<0.000000e+00> : vector<8x128xf32>
    %17 = tpu.matmul %15, %16, %cst_9 {dimension_numbers = #tpu.dot_dimension_numbers<[1], [0], [0], [1], [0, 0, 1, 1], [], []>} : vector<8x128xf32>, vector<128x128xf32>, vector<8x128xf32> -> vector<8x128xf32>
    %18 = vector.extract_strided_slice %0 {offsets = [2, 0], sizes = [1, 128], strides = [1, 1]} : vector<8x128xf32> to vector<1x128xf32>
    %19 = vector.broadcast %18 : vector<1x128xf32> to vector<8x128xf32>
    %20 = arith.addf %17, %19 : vector<8x128xf32>
    %cst_10 = arith.constant 0.000000e+00 : f32
    %21 = vector.broadcast %cst_10 : f32 to vector<8x128xf32>
    %22 = arith.maximumf %20, %21 : vector<8x128xf32>
    %c512 = arith.constant 512 : index
    %c0_11 = arith.constant 0 : index
    %23 = vector.load %arg1[%c512, %c0_11] : memref<904x128xf32, #tpu.memory_space<vmem>>, vector<128x128xf32>
    %cst_12 = arith.constant dense<0.000000e+00> : vector<8x128xf32>
    %24 = tpu.matmul %22, %23, %cst_12 {dimension_numbers = #tpu.dot_dimension_numbers<[1], [0], [0], [1], [0, 0, 1, 1], [], []>} : vector<8x128xf32>, vector<128x128xf32>, vector<8x128xf32> -> vector<8x128xf32>
    %25 = vector.extract_strided_slice %0 {offsets = [3, 0], sizes = [1, 128], strides = [1, 1]} : vector<8x128xf32> to vector<1x128xf32>
    %26 = vector.broadcast %25 : vector<1x128xf32> to vector<8x128xf32>
    %27 = arith.addf %24, %26 : vector<8x128xf32>
    %cst_13 = arith.constant 0.000000e+00 : f32
    %28 = vector.broadcast %cst_13 : f32 to vector<8x128xf32>
    %29 = arith.maximumf %27, %28 : vector<8x128xf32>
    %c640 = arith.constant 640 : index
    %c0_14 = arith.constant 0 : index
    %30 = vector.load %arg1[%c640, %c0_14] : memref<904x128xf32, #tpu.memory_space<vmem>>, vector<128x128xf32>
    %cst_15 = arith.constant dense<0.000000e+00> : vector<8x128xf32>
    %31 = tpu.matmul %29, %30, %cst_15 {dimension_numbers = #tpu.dot_dimension_numbers<[1], [0], [0], [1], [0, 0, 1, 1], [], []>} : vector<8x128xf32>, vector<128x128xf32>, vector<8x128xf32> -> vector<8x128xf32>
    %32 = vector.extract_strided_slice %0 {offsets = [4, 0], sizes = [1, 128], strides = [1, 1]} : vector<8x128xf32> to vector<1x128xf32>
    %33 = vector.broadcast %32 : vector<1x128xf32> to vector<8x128xf32>
    %34 = arith.addf %31, %33 : vector<8x128xf32>
    %cst_16 = arith.constant 0.000000e+00 : f32
    %35 = vector.broadcast %cst_16 : f32 to vector<8x128xf32>
    %36 = arith.maximumf %34, %35 : vector<8x128xf32>
    %c768 = arith.constant 768 : index
    %c0_17 = arith.constant 0 : index
    %37 = vector.load %arg1[%c768, %c0_17] : memref<904x128xf32, #tpu.memory_space<vmem>>, vector<128x128xf32>
    %cst_18 = arith.constant dense<0.000000e+00> : vector<8x128xf32>
    %38 = tpu.matmul %36, %37, %cst_18 {dimension_numbers = #tpu.dot_dimension_numbers<[1], [0], [0], [1], [0, 0, 1, 1], [], []>} : vector<8x128xf32>, vector<128x128xf32>, vector<8x128xf32> -> vector<8x128xf32>
    %39 = vector.extract_strided_slice %0 {offsets = [5, 0], sizes = [1, 128], strides = [1, 1]} : vector<8x128xf32> to vector<1x128xf32>
    %40 = vector.broadcast %39 : vector<1x128xf32> to vector<8x128xf32>
    %41 = arith.addf %38, %40 : vector<8x128xf32>
    %c0_19 = arith.constant 0 : index
    %c0_20 = arith.constant 0 : index
    %42 = vector.load %arg2[%c0_19, %c0_20] : memref<8x128xf32, #tpu.memory_space<vmem>>, vector<8x128xf32>
    tpu.vector_store %arg2[%c0_19, %c0_20], %41 {strides = array<i32>} : memref<8x128xf32, #tpu.memory_space<vmem>>, vector<8x128xf32>,
    return
  }
}

</mosaic_0001>

<bundles_post_ra>
// kernel: vanilla_dop_forward.1
= control target key start
LH: loop header
LB: loop body
LE: loop exit
PB: predicated region body
PF: predicated region fallthrough
CT: control target
= control target key end

     0   :  { %7 = vsyncpa [#allocation3], 0  ;;  %s917_s9 = smov [#allocation2]   ;;  %s1055_s0 = inlined_call_operand.vmem [shape: f32[8,256], index: 0, kind: input, shape index: {}]   ;;  %s1056_s1 = inlined_call_operand.hbm [shape: f32[904,128], index: 1, kind: input, shape index: {}]   ;;  %s1057_s2 = inlined_call_operand.vmem [shape: f32[8,128], index: 2, kind: output, shape index: {}]  }
   0x1   :  { %s15_s10 = sshll.u32 %s917_s9, 4  ;;  %s16_s10 = int_to_ptr.vmem [resolvable:$true] %s15_s10 }
   0x2   :  { %s903_s11 = scalar_lea.vmem %s16_s10, 14464  ;;  %p908_p1 = scmp.lt.s32.totalorder %s16_s10, %s16_s10 }
   0x3   :  { %p904_p0 = scmp.ne.s32.totalorder %s16_s10, %s903_s11  ;;  %p909_p2 = scmp.lt.s32.totalorder %s903_s11, %s903_s11 }
   0x5   :  { %p910_p3 = por %p909_p2, %p908_p1 }
   0x7   :  { %p911_p4 = pnand %p910_p3, %p904_p0 }
   0x9   :  { %914 = shalt.err (!%p911_p4)
}
   0xa   :  { %s918_s12 = smov 128   ;;  %s919_s13 = smov 8  }
   0xb   :  { %21 = dma.hbm_to_vmem [thread:$0]  %s1056_s1, 14464, %s16_s10, [#allocation3], %s918_s12, %s918_s12, %s919_s13  }
   0xc   :  { %915 = dma.done.wait [#allocation3], 14464  }
   0xd   :  { %916 = vsyncadd [#allocation3], 4294952832  ;;  %v920_v0 = vmov 0.0   ;;  %v59_v1 = vld [vmem:[#allocation2 + $0xf8] sm:$0xff]  ;;  %v58_v3 = vld [vmem:[#allocation2 + $0xf0] sm:$0xff]  ;;  %vm921_vm0 = vmmov 0  }
   0xe   :  { %715 = vmatprep.subr.mxu1 %v920_v0  ;;  %v43_v2 = vld [vmem:[#allocation2 + $0x78] sm:$0xff]  ;;  %595 = vmatprep.subr.mxu0 %v59_v1  ;;  %v42_v4 = vld [vmem:[#allocation2 + $0x70] sm:$0xff]  ;;  %v57_v5 = vld [vmem:[#allocation2 + $0xe8] sm:$0xff]  ;;  %v60_v1 = vlaneseq }
   0xf   :  { %596 = vmatpush3.msra.mxu0 %v43_v2  ;;  %v41_v6 = vld [vmem:[#allocation2 + $0x68] sm:$0xff]  ;;  %v56_v7 = vld [vmem:[#allocation2 + $0xe0] sm:$0xff]  ;;  %v55_v9 = vld [vmem:[#allocation2 + $0xd8] sm:$0xff]  ;;  %747 = vmatprep.mubr.msk.f32.mxu1 %vm921_vm0, %v920_v0 }
  0x10   :  { %597 = vmatprep.subr.mxu0 %v58_v3  ;;  %v40_v8 = vld [vmem:[#allocation2 + $0x60] sm:$0xff]  ;;  %v39_v10 = vld [vmem:[#allocation2 + $0x58] sm:$0xff]  ;;  %v54_v11 = vld [vmem:[#allocation2 + $0xd0] sm:$0xff]  ;;  %v981_v2 = vshrl.u32 %v60_v1, 7 }
  0x11   :  { %598 = vmatpush3.msra.mxu0 %v42_v4  ;;  %v38_v12 = vld [vmem:[#allocation2 + $0x50] sm:$0xff]  ;;  %v53_v13 = vld [vmem:[#allocation2 + $0xc8] sm:$0xff]  ;;  %v150_v16 = vld [vmem:[#allocation2 + $0x178] sm:$0xff] }
  0x12   :  { %599 = vmatprep.subr.mxu0 %v57_v5  ;;  %v27_v14 = vld [vmem:[%s1055_s0 + $0x8] sm:$0xff]  ;;  %v149_v17 = vld [vmem:[#allocation2 + $0x170] sm:$0xff]  ;;  %v52_v18 = vld [vmem:[#allocation2 + $0xc0] sm:$0xff]  ;;  %716 = vmatpush3.msra.mxu1 %v150_v16  ;;  %v62_v3 = vsub.s32 0, %v981_v2 }
  0x13   :  { %600 = vmatpush3.msra.mxu0 %v41_v6  ;;  %v37_v15 = vld [vmem:[#allocation2 + $0x48] sm:$0xff]  ;;  %128 = vmatprep.mubr.f32.mxu0 %v27_v14  ;;  %v36_v19 = vld [vmem:[#allocation2 + $0x40] sm:$0xff]  ;;  %v51_v21 = vld [vmem:[#allocation2 + $0xb8] sm:$0xff] }
  0x14   :  { %601 = vmatprep.subr.mxu0 %v56_v7  ;;  %717 = vmatprep.subr.mxu1 %v920_v0  ;;  %v148_v20 = vld [vmem:[#allocation2 + $0x168] sm:$0xff]  ;;  %v35_v22 = vld [vmem:[#allocation2 + $0x38] sm:$0xff]  ;;  %v147_v23 = vld [vmem:[#allocation2 + $0x160] sm:$0xff] }
  0x15   :  { %602 = vmatpush3.msra.mxu0 %v40_v8  ;;  %718 = vmatpush3.msra.mxu1 %v149_v17  ;;  %v50_v24 = vld [vmem:[#allocation2 + $0xb0] sm:$0xff]  ;;  %v146_v26 = vld [vmem:[#allocation2 + $0x158] sm:$0xff]  ;;  %v49_v27 = vld [vmem:[#allocation2 + $0xa8] sm:$0xff] }
  0x16   :  { %603 = vmatprep.subr.mxu0 %v55_v9  ;;  %719 = vmatprep.subr.mxu1 %v920_v0  ;;  %v34_v25 = vld [vmem:[#allocation2 + $0x30] sm:$0xff]  ;;  %v33_v28 = vld [vmem:[#allocation2 + $0x28] sm:$0xff]  ;;  %v48_v30 = vld [vmem:[#allocation2 + $0xa0] sm:$0xff] }
  0x17   :  { %604 = vmatpush3.msra.mxu0 %v39_v10  ;;  %720 = vmatpush3.msra.mxu1 %v148_v20  ;;  %v145_v29 = vld [vmem:[#allocation2 + $0x150] sm:$0xff]  ;;  %v32_v31 = vld [vmem:[#allocation2 + $0x20] sm:$0xff]  ;;  %v144_v32 = vld [vmem:[#allocation2 + $0x148] sm:$0xff] }
  0x18   :  { %605 = vmatprep.subr.mxu0 %v54_v11  ;;  %721 = vmatprep.subr.mxu1 %v920_v0  ;;  %v47_v33 = vld [vmem:[#allocation2 + $0x98] sm:$0xff]  ;;  %v143_v35 = vld [vmem:[#allocation2 + $0x140] sm:$0xff]  ;;  %v46_v36 = vld [vmem:[#allocation2 + $0x90] sm:$0xff] }
  0x19   :  { %606 = vmatpush3.msra.mxu0 %v38_v12  ;;  %722 = vmatpush3.msra.mxu1 %v147_v23  ;;  %v31_v34 = vld [vmem:[#allocation2 + $0x18] sm:$0xff]  ;;  %v30_v37 = vld [vmem:[#allocation2 + $0x10] sm:$0xff]  ;;  %v45_v39 = vld [vmem:[#allocation2 + $0x88] sm:$0xff] }
  0x1a   :  { %607 = vmatprep.subr.mxu0 %v53_v13  ;;  %723 = vmatprep.subr.mxu1 %v920_v0  ;;  %v142_v38 = vld [vmem:[#allocation2 + $0x138] sm:$0xff]  ;;  %v29_v40 = vld [vmem:[#allocation2 + $0x8] sm:$0xff]  ;;  %v141_v41 = vld [vmem:[#allocation2 + $0x130] sm:$0xff] }
  0x1b   :  { %608 = vmatpush3.msra.mxu0 %v37_v15  ;;  %724 = vmatpush3.msra.mxu1 %v146_v26  ;;  %v44_v42 = vld [vmem:[#allocation2 + $0x80] sm:$0xff]  ;;  %v140_v44 = vld [vmem:[#allocation2 + $0x128] sm:$0xff]  ;;  %v138_v47 = vld [vmem:[#allocation2 + $0x118] sm:$0xff] }
  0x1c   :  { %609 = vmatprep.subr.mxu0 %v52_v18  ;;  %725 = vmatprep.subr.mxu1 %v920_v0  ;;  %v28_v43 = vld [vmem:[#allocation2] sm:$0xff]  ;;  %v137_v48 = vld [vmem:[#allocation2 + $0x110] sm:$0xff]  ;;  %v136_v49 = vld [vmem:[#allocation2 + $0x108] sm:$0xff] }
  0x1d   :  { %610 = vmatpush3.msra.mxu0 %v36_v19  ;;  %726 = vmatpush3.msra.mxu1 %v145_v29  ;;  %v26_v45 = vld [vmem:[%s1055_s0] sm:$0xff]  ;;  %v241_v51 = vld [vmem:[#allocation2 + $0x1f8] sm:$0xff]  ;;  %v240_v52 = vld [vmem:[#allocation2 + $0x1f0] sm:$0xff] }
  0x1e   :  { %611 = vmatprep.subr.mxu0 %v51_v21  ;;  %727 = vmatprep.subr.mxu1 %v920_v0  ;;  %v139_v46 = vld [vmem:[#allocation2 + $0x120] sm:$0xff]  ;;  %v239_v53 = vld [vmem:[#allocation2 + $0x1e8] sm:$0xff]  ;;  %v237_v55 = vld [vmem:[#allocation2 + $0x1d8] sm:$0xff] }
  0x1f   :  { %612 = vmatpush3.msra.mxu0 %v35_v22  ;;  %728 = vmatpush3.msra.mxu1 %v144_v32  ;;  %v135_v50 = vld [vmem:[#allocation2 + $0x100] sm:$0xff]  ;;  %v236_v56 = vld [vmem:[#allocation2 + $0x1d0] sm:$0xff]  ;;  %v235_v57 = vld [vmem:[#allocation2 + $0x1c8] sm:$0xff] }
  0x20   :  { %613 = vmatprep.subr.mxu0 %v50_v24  ;;  %729 = vmatprep.subr.mxu1 %v920_v0  ;;  %v238_v54 = vld [vmem:[#allocation2 + $0x1e0] sm:$0xff]  ;;  %v233_v59 = vld [vmem:[#allocation2 + $0x1b8] sm:$0xff]  ;;  %v232_v60 = vld [vmem:[#allocation2 + $0x1b0] sm:$0xff] }
  0x21   :  { %614 = vmatpush3.msra.mxu0 %v34_v25  ;;  %730 = vmatpush3.msra.mxu1 %v143_v35  ;;  %v234_v58 = vld [vmem:[#allocation2 + $0x1c0] sm:$0xff]  ;;  %v231_v61 = vld [vmem:[#allocation2 + $0x1a8] sm:$0xff]  ;;  %v229_v63 = vld [vmem:[#allocation2 + $0x198] sm:$0xff] }
  0x22   :  { %615 = vmatprep.subr.mxu0 %v49_v27  ;;  %731 = vmatprep.subr.mxu1 %v920_v0  ;;  %v230_v62 = vld [vmem:[#allocation2 + $0x1a0] sm:$0xff]  ;;  %v228_v11 = vld [vmem:[#allocation2 + $0x190] sm:$0xff]  ;;  %v227_v12 = vld [vmem:[#allocation2 + $0x188] sm:$0xff]  ;;  %v153_v27 = vsub.s32 1, %v981_v2 }
  0x23   :  { %616 = vmatpush3.msra.mxu0 %v33_v28  ;;  %732 = vmatpush3.msra.mxu1 %v142_v38  ;;  %v984_v4 = vld [vmem:[#allocation2 + $0x380] sm:$0xff]  ;;  %v332_v14 = vld [vmem:[#allocation2 + $0x278] sm:$0xff]  ;;  %v331_v15 = vld [vmem:[#allocation2 + $0x270] sm:$0xff] }
  0x24   :  { %617 = vmatprep.subr.mxu0 %v48_v30  ;;  %733 = vmatprep.subr.mxu1 %v920_v0  ;;  %v63_v6 = vrot.slane %v984_v4, %v62_v3  ;;  %v226_v13 = vld [vmem:[#allocation2 + $0x180] sm:$0xff]  ;;  %v330_v16 = vld [vmem:[#allocation2 + $0x268] sm:$0xff]  ;;  %v328_v18 = vld [vmem:[#allocation2 + $0x258] sm:$0xff]  ;;  %v154_v28 = vrot.slane %v984_v4, %v153_v27 }
  0x25   :  { %618 = vmatpush3.msra.mxu0 %v32_v31  ;;  %734 = vmatpush3.msra.mxu1 %v141_v41  ;;  %v329_v17 = vld [vmem:[#allocation2 + $0x260] sm:$0xff]  ;;  %v327_v19 = vld [vmem:[#allocation2 + $0x250] sm:$0xff]  ;;  %v326_v20 = vld [vmem:[#allocation2 + $0x248] sm:$0xff] }
  0x26   :  { %619 = vmatprep.subr.mxu0 %v47_v33  ;;  %735 = vmatprep.subr.mxu1 %v920_v0  ;;  %v325_v21 = vld [vmem:[#allocation2 + $0x240] sm:$0xff]  ;;  %v324_v22 = vld [vmem:[#allocation2 + $0x238] sm:$0xff]  ;;  %v323_v23 = vld [vmem:[#allocation2 + $0x230] sm:$0xff] }
  0x27   :  { %620 = vmatpush3.msra.mxu0 %v31_v34  ;;  %736 = vmatpush3.msra.mxu1 %v140_v44  ;;  %v322_v24 = vld [vmem:[#allocation2 + $0x228] sm:$0xff]  ;;  %v321_v25 = vld [vmem:[#allocation2 + $0x220] sm:$0xff]  ;;  %v320_v26 = vld [vmem:[#allocation2 + $0x218] sm:$0xff] }
  0x28   :  { %621 = vmatprep.subr.mxu0 %v46_v36  ;;  %737 = vmatprep.subr.mxu1 %v920_v0  ;;  %v319_v33 = vld [vmem:[#allocation2 + $0x210] sm:$0xff]  ;;  %v318_v34 = vld [vmem:[#allocation2 + $0x208] sm:$0xff]  ;;  %v317_v35 = vld [vmem:[#allocation2 + $0x200] sm:$0xff] }
  0x29   :  { %622 = vmatpush3.msra.mxu0 %v30_v37  ;;  %738 = vmatpush3.msra.mxu1 %v139_v46  ;;  %v423_v36 = vld [vmem:[#allocation2 + $0x2f8] sm:$0xff]  ;;  %v422_v37 = vld [vmem:[#allocation2 + $0x2f0] sm:$0xff]  ;;  %v421_v38 = vld [vmem:[#allocation2 + $0x2e8] sm:$0xff] }
  0x2a   :  { %623 = vmatprep.subr.mxu0 %v45_v39  ;;  %739 = vmatprep.subr.mxu1 %v920_v0  ;;  %v420_v39 = vld [vmem:[#allocation2 + $0x2e0] sm:$0xff]  ;;  %v418_v41 = vld [vmem:[#allocation2 + $0x2d0] sm:$0xff]  ;;  %v415_v44 = vld [vmem:[#allocation2 + $0x2b8] sm:$0xff] }
  0x2b   :  { %624 = vmatpush3.msra.mxu0 %v29_v40  ;;  %740 = vmatpush3.msra.mxu1 %v138_v47  ;;  %v419_v40 = vld [vmem:[#allocation2 + $0x2d8] sm:$0xff]  ;;  %v413_v46 = vld [vmem:[#allocation2 + $0x2a8] sm:$0xff]  ;;  %v412_v47 = vld [vmem:[#allocation2 + $0x2a0] sm:$0xff] }
  0x2c   :  { %625 = vmatprep.subr.mxu0 %v44_v42  ;;  %741 = vmatprep.subr.mxu1 %v920_v0  ;;  %v417_v42 = vld [vmem:[#allocation2 + $0x2c8] sm:$0xff]  ;;  %v507_v3 = vld [vmem:[#allocation2 + $0x340] sm:$0xff] }
  0x2d   :  { %626 = vmatpush3.msra.mxu0 %v28_v43  ;;  %742 = vmatpush3.msra.mxu1 %v137_v48  ;;  %v416_v43 = vld [vmem:[#allocation2 + $0x2c0] sm:$0xff]  ;;  %v411_v48 = vld [vmem:[#allocation2 + $0x298] sm:$0xff]  ;;  %v508_v1 = vld [vmem:[#allocation2 + $0x348] sm:$0xff] }
  0x2e   :  { %129 = vmatmul.mubr.f32.vlgmr.msra.gmra.mxu0 %v26_v45  ;;  %750 = vmatprep.subr.mxu0 %v920_v0  ;;  %v414_v45 = vld [vmem:[#allocation2 + $0x2b0] sm:$0xff] }
  0x2f   :  { %743 = vmatprep.subr.mxu1 %v920_v0  ;;  %782 = vmatprep.mubr.msk.f32.mxu0 %vm921_vm0, %v920_v0 }
  0x30   :  { %744 = vmatpush3.msra.mxu1 %v136_v49  ;;  %751 = vmatpush3.msra.mxu0 %v241_v51  ;;  %v244_v49 = vsub.s32 2, %v981_v2 }
  0x31   :  { %745 = vmatprep.subr.mxu1 %v920_v0  ;;  %752 = vmatprep.subr.mxu0 %v920_v0 }
  0x32   :  { %746 = vmatpush3.msra.mxu1 %v135_v50  ;;  %753 = vmatpush3.msra.mxu0 %v240_v52  ;;  %v245_v50 = vrot.slane %v984_v4, %v244_v49 }
  0x33   :  { %785 = vmatprep.subr.mxu1 %v920_v0  ;;  %754 = vmatprep.subr.mxu0 %v920_v0 }
  0x34   :  { %755 = vmatpush3.msra.mxu0 %v239_v53 }
  0x35   :  { %756 = vmatprep.subr.mxu0 %v920_v0 }
  0x36   :  { %757 = vmatpush3.msra.mxu0 %v238_v54 }
  0x37   :  { %758 = vmatprep.subr.mxu0 %v920_v0 }
  0x38   :  { %759 = vmatpush3.msra.mxu0 %v237_v55  ;;  %v410_v55 = vld [vmem:[#allocation2 + $0x290] sm:$0xff] }
  0x39   :  { %760 = vmatprep.subr.mxu0 %v920_v0 }
  0x3a   :  { %761 = vmatpush3.msra.mxu0 %v236_v56  ;;  %v409_v56 = vld [vmem:[#allocation2 + $0x288] sm:$0xff] }
  0x3b   :  { %762 = vmatprep.subr.mxu0 %v920_v0 }
  0x3c   :  { %763 = vmatpush3.msra.mxu0 %v235_v57  ;;  %v408_v57 = vld [vmem:[#allocation2 + $0x280] sm:$0xff] }
  0x3d   :  { %764 = vmatprep.subr.mxu0 %v920_v0 }
  0x3e   :  { %765 = vmatpush3.msra.mxu0 %v234_v58  ;;  %v514_v58 = vld [vmem:[#allocation2 + $0x378] sm:$0xff] }
  0x3f   :  { %766 = vmatprep.subr.mxu0 %v920_v0 }
  0x40   :  { %767 = vmatpush3.msra.mxu0 %v233_v59  ;;  %v513_v59 = vld [vmem:[#allocation2 + $0x370] sm:$0xff] }
  0x41   :  { %768 = vmatprep.subr.mxu0 %v920_v0 }
  0x42   :  { %769 = vmatpush3.msra.mxu0 %v232_v60  ;;  %v512_v60 = vld [vmem:[#allocation2 + $0x368] sm:$0xff] }
  0x43   :  { %770 = vmatprep.subr.mxu0 %v920_v0 }
  0x44   :  { %771 = vmatpush3.msra.mxu0 %v231_v61  ;;  %v511_v61 = vld [vmem:[#allocation2 + $0x360] sm:$0xff] }
  0x45   :  { %772 = vmatprep.subr.mxu0 %v920_v0 }
  0x46   :  { %773 = vmatpush3.msra.mxu0 %v230_v62  ;;  %v510_v62 = vld [vmem:[#allocation2 + $0x358] sm:$0xff] }
  0x47   :  { %774 = vmatprep.subr.mxu0 %v920_v0 }
  0x48   :  { %775 = vmatpush3.msra.mxu0 %v229_v63  ;;  %v509_v63 = vld [vmem:[#allocation2 + $0x350] sm:$0xff] }
  0x49   :  { %776 = vmatprep.subr.mxu0 %v920_v0 }
  0x4a   :  { %777 = vmatpush3.msra.mxu0 %v228_v11 }
  0x4b   :  { %778 = vmatprep.subr.mxu0 %v920_v0 }
  0x4c   :  { %779 = vmatpush3.msra.mxu0 %v227_v12 }
  0x4d   :  { %780 = vmatprep.subr.mxu0 %v920_v0 }
  0x4e   :  { %781 = vmatpush3.msra.mxu0 %v226_v13 }
  0x4f   :  { %820 = vmatprep.subr.mxu0 %v920_v0 }
  0xee   :  { %v627_v5 = vpop.f32.mrf.mxu0 }
  0xf0   :  { %v628_v7 = vpop.f32.mrf.mxu0 }
  0xf1   :  { %v629_v8 = vadd.f32 %v628_v7, %v627_v5  ;;  %v506_v5 = vld [vmem:[#allocation2 + $0x338] sm:$0xff]  ;;  %v504_v7 = vld [vmem:[#allocation2 + $0x328] sm:$0xff] }
  0xf3   :  { %v131_v9 = vadd.f32 %v629_v8, %v63_v6  ;;  %v505_v6 = vld [vmem:[#allocation2 + $0x330] sm:$0xff]  ;;  %v503_v8 = vld [vmem:[#allocation2 + $0x320] sm:$0xff] }
  0xf5   :  { %v134_v10 = vmax.f32 %v131_v9, 0.0  ;;  %v502_v9 = vld [vmem:[#allocation2 + $0x318] sm:$0xff] }
  0xf7   :  { %748 = vmatmul.mubr.f32.vlgmr.msra.gmra.mxu1 %v134_v10  ;;  %v335_v10 = vsub.s32 3, %v981_v2 }
  0xf8   :  { %817 = vmatprep.mubr.msk.f32.mxu1 %vm921_vm0, %v920_v0  ;;  %786 = vmatpush3.msra.mxu1 %v332_v14 }
  0xf9   :  { %787 = vmatprep.subr.mxu1 %v920_v0  ;;  %v336_v11 = vrot.slane %v984_v4, %v335_v10 }
  0xfa   :  { %788 = vmatpush3.msra.mxu1 %v331_v15 }
  0xfb   :  { %789 = vmatprep.subr.mxu1 %v920_v0 }
  0xfc   :  { %790 = vmatpush3.msra.mxu1 %v330_v16  ;;  %v501_v16 = vld [vmem:[#allocation2 + $0x310] sm:$0xff] }
  0xfd   :  { %791 = vmatprep.subr.mxu1 %v920_v0 }
  0xfe   :  { %792 = vmatpush3.msra.mxu1 %v329_v17  ;;  %v500_v17 = vld [vmem:[#allocation2 + $0x308] sm:$0xff] }
  0xff   :  { %793 = vmatprep.subr.mxu1 %v920_v0 }
 0x100   :  { %794 = vmatpush3.msra.mxu1 %v328_v18  ;;  %v499_v18 = vld [vmem:[#allocation2 + $0x300] sm:$0xff] }
 0x101   :  { %795 = vmatprep.subr.mxu1 %v920_v0 }
 0x102   :  { %796 = vmatpush3.msra.mxu1 %v327_v19  ;;  %v426_v19 = vsub.s32 4, %v981_v2 }
 0x103   :  { %797 = vmatprep.subr.mxu1 %v920_v0 }
 0x104   :  { %798 = vmatpush3.msra.mxu1 %v326_v20  ;;  %v427_v20 = vrot.slane %v984_v4, %v426_v19 }
 0x105   :  { %799 = vmatprep.subr.mxu1 %v920_v0 }
 0x106   :  { %800 = vmatpush3.msra.mxu1 %v325_v21 }
 0x107   :  { %801 = vmatprep.subr.mxu1 %v920_v0 }
 0x108   :  { %802 = vmatpush3.msra.mxu1 %v324_v22 }
 0x109   :  { %803 = vmatprep.subr.mxu1 %v920_v0 }
 0x10a   :  { %804 = vmatpush3.msra.mxu1 %v323_v23 }
 0x10b   :  { %805 = vmatprep.subr.mxu1 %v920_v0 }
 0x10c   :  { %806 = vmatpush3.msra.mxu1 %v322_v24 }
 0x10d   :  { %807 = vmatprep.subr.mxu1 %v920_v0 }
 0x10e   :  { %808 = vmatpush3.msra.mxu1 %v321_v25  ;;  %v517_v25 = vsub.s32 5, %v981_v2 }
 0x10f   :  { %809 = vmatprep.subr.mxu1 %v920_v0 }
 0x110   :  { %810 = vmatpush3.msra.mxu1 %v320_v26  ;;  %v518_v26 = vrot.slane %v984_v4, %v517_v25 }
 0x111   :  { %811 = vmatprep.subr.mxu1 %v920_v0 }
 0x112   :  { %812 = vmatpush3.msra.mxu1 %v319_v33 }
 0x113   :  { %813 = vmatprep.subr.mxu1 %v920_v0 }
 0x114   :  { %814 = vmatpush3.msra.mxu1 %v318_v34 }
 0x115   :  { %815 = vmatprep.subr.mxu1 %v920_v0 }
 0x116   :  { %816 = vmatpush3.msra.mxu1 %v317_v35 }
 0x117   :  { %855 = vmatprep.subr.mxu1 %v920_v0 }
 0x1b7   :  { %v221_v29 = vpop.f32.mrf.mxu1 }
 0x1b8   :  { %v222_v30 = vadd.f32 %v221_v29, %v154_v28 }
 0x1b9   :  { %v749_v31 = vpop.f32.mrf.mxu1 }
 0x1ba   :  { %v225_v32 = vmax.f32 %v222_v30, 0.0 }
 0x1bc   :  { %783 = vmatmul.mubr.f32.vlgmr.msra.gmra.mxu0 %v225_v32 }
 0x1bd   :  { %852 = vmatprep.mubr.msk.f32.mxu0 %vm921_vm0, %v920_v0  ;;  %821 = vmatpush3.msra.mxu0 %v423_v36 }
 0x1be   :  { %822 = vmatprep.subr.mxu0 %v920_v0 }
 0x1bf   :  { %823 = vmatpush3.msra.mxu0 %v422_v37 }
 0x1c0   :  { %824 = vmatprep.subr.mxu0 %v920_v0 }
 0x1c1   :  { %825 = vmatpush3.msra.mxu0 %v421_v38 }
 0x1c2   :  { %826 = vmatprep.subr.mxu0 %v920_v0 }
 0x1c3   :  { %827 = vmatpush3.msra.mxu0 %v420_v39 }
 0x1c4   :  { %828 = vmatprep.subr.mxu0 %v920_v0 }
 0x1c5   :  { %829 = vmatpush3.msra.mxu0 %v419_v40 }
 0x1c6   :  { %830 = vmatprep.subr.mxu0 %v920_v0 }
 0x1c7   :  { %831 = vmatpush3.msra.mxu0 %v418_v41 }
 0x1c8   :  { %832 = vmatprep.subr.mxu0 %v920_v0 }
 0x1c9   :  { %833 = vmatpush3.msra.mxu0 %v417_v42 }
 0x1ca   :  { %834 = vmatprep.subr.mxu0 %v920_v0 }
 0x1cb   :  { %835 = vmatpush3.msra.mxu0 %v416_v43 }
 0x1cc   :  { %836 = vmatprep.subr.mxu0 %v920_v0 }
 0x1cd   :  { %837 = vmatpush3.msra.mxu0 %v415_v44 }
 0x1ce   :  { %838 = vmatprep.subr.mxu0 %v920_v0 }
 0x1cf   :  { %839 = vmatpush3.msra.mxu0 %v414_v45 }
 0x1d0   :  { %840 = vmatprep.subr.mxu0 %v920_v0 }
 0x1d1   :  { %841 = vmatpush3.msra.mxu0 %v413_v46 }
 0x1d2   :  { %842 = vmatprep.subr.mxu0 %v920_v0 }
 0x1d3   :  { %843 = vmatpush3.msra.mxu0 %v412_v47 }
 0x1d4   :  { %844 = vmatprep.subr.mxu0 %v920_v0 }
 0x1d5   :  { %845 = vmatpush3.msra.mxu0 %v411_v48 }
 0x1d6   :  { %846 = vmatprep.subr.mxu0 %v920_v0 }
 0x1d7   :  { %847 = vmatpush3.msra.mxu0 %v410_v55 }
 0x1d8   :  { %848 = vmatprep.subr.mxu0 %v920_v0 }
 0x1d9   :  { %849 = vmatpush3.msra.mxu0 %v409_v56 }
 0x1da   :  { %850 = vmatprep.subr.mxu0 %v920_v0 }
 0x1db   :  { %851 = vmatpush3.msra.mxu0 %v408_v57 }
 0x27c   :  { %v312_v51 = vpop.f32.mrf.mxu0 }
 0x27d   :  { %v313_v52 = vadd.f32 %v312_v51, %v245_v50 }
 0x27e   :  { %v784_v53 = vpop.f32.mrf.mxu0 }
 0x27f   :  { %v316_v54 = vmax.f32 %v313_v52, 0.0 }
 0x281   :  { %818 = vmatmul.mubr.f32.vlgmr.msra.gmra.mxu1 %v316_v54 }
 0x282   :  { %887 = vmatprep.mubr.msk.f32.mxu1 %vm921_vm0, %v920_v0  ;;  %856 = vmatpush3.msra.mxu1 %v514_v58 }
 0x283   :  { %857 = vmatprep.subr.mxu1 %v920_v0 }
 0x284   :  { %858 = vmatpush3.msra.mxu1 %v513_v59 }
 0x285   :  { %859 = vmatprep.subr.mxu1 %v920_v0 }
 0x286   :  { %860 = vmatpush3.msra.mxu1 %v512_v60 }
 0x287   :  { %861 = vmatprep.subr.mxu1 %v920_v0 }
 0x288   :  { %862 = vmatpush3.msra.mxu1 %v511_v61 }
 0x289   :  { %863 = vmatprep.subr.mxu1 %v920_v0 }
 0x28a   :  { %864 = vmatpush3.msra.mxu1 %v510_v62 }
 0x28b   :  { %865 = vmatprep.subr.mxu1 %v920_v0 }
 0x28c   :  { %866 = vmatpush3.msra.mxu1 %v509_v63 }
 0x28d   :  { %867 = vmatprep.subr.mxu1 %v920_v0 }
 0x28e   :  { %868 = vmatpush3.msra.mxu1 %v508_v1 }
 0x28f   :  { %869 = vmatprep.subr.mxu1 %v920_v0 }
 0x290   :  { %870 = vmatpush3.msra.mxu1 %v507_v3 }
 0x291   :  { %871 = vmatprep.subr.mxu1 %v920_v0 }
 0x292   :  { %872 = vmatpush3.msra.mxu1 %v506_v5 }
 0x293   :  { %873 = vmatprep.subr.mxu1 %v920_v0 }
 0x294   :  { %874 = vmatpush3.msra.mxu1 %v505_v6 }
 0x295   :  { %875 = vmatprep.subr.mxu1 %v920_v0 }
 0x296   :  { %876 = vmatpush3.msra.mxu1 %v504_v7 }
 0x297   :  { %877 = vmatprep.subr.mxu1 %v920_v0 }
 0x298   :  { %878 = vmatpush3.msra.mxu1 %v503_v8 }
 0x299   :  { %879 = vmatprep.subr.mxu1 %v920_v0 }
 0x29a   :  { %880 = vmatpush3.msra.mxu1 %v502_v9 }
 0x29b   :  { %881 = vmatprep.subr.mxu1 %v920_v0 }
 0x29c   :  { %882 = vmatpush3.msra.mxu1 %v501_v16 }
 0x29d   :  { %883 = vmatprep.subr.mxu1 %v920_v0 }
 0x29e   :  { %884 = vmatpush3.msra.mxu1 %v500_v17 }
 0x29f   :  { %885 = vmatprep.subr.mxu1 %v920_v0 }
 0x2a0   :  { %886 = vmatpush3.msra.mxu1 %v499_v18 }
 0x341   :  { %v403_v12 = vpop.f32.mrf.mxu1 }
 0x342   :  { %v404_v13 = vadd.f32 %v403_v12, %v336_v11 }
 0x343   :  { %v819_v14 = vpop.f32.mrf.mxu1 }
 0x344   :  { %v407_v15 = vmax.f32 %v404_v13, 0.0 }
 0x346   :  { %853 = vmatmul.mubr.f32.vlgmr.msra.gmra.mxu0 %v407_v15 }
 0x406   :  { %v494_v21 = vpop.f32.mrf.mxu0 }
 0x407   :  { %v495_v22 = vadd.f32 %v494_v21, %v427_v20 }
 0x408   :  { %v854_v23 = vpop.f32.mrf.mxu0 }
 0x409   :  { %v498_v24 = vmax.f32 %v495_v22, 0.0 }
 0x40b   :  { %888 = vmatmul.mubr.f32.vlgmr.msra.gmra.mxu1 %v498_v24 }
 0x4cb   :  { %v585_v27 = vpop.f32.mrf.mxu1 }
 0x4cc   :  { %v586_v28 = vadd.f32 %v585_v27, %v518_v26 }
 0x4cd   :  { %v889_v29 = vpop.f32.mrf.mxu1 }
 0x4ce   :  { %589 = vst [vmem:[%s1057_s2] sm:$0xff] %v586_v28 }
 0x4cf   :  { %594 = vsyncpa [#allocation3], 1 }

</bundles_post_ra>
